<compile_context>
chip_gen: v7x
topology: tpu7x:2x2x1
jax: 0.10.0
libtpu: 0.0.40
codegen_flags: <defaults>
</compile_context>

<pallas_src>
import jax
import jax.numpy as jnp
from jax.experimental import pallas as pl
from jax.experimental.pallas import tpu as pltpu


def _thresholder_kernel(c1_ref, x_ref, o_ref):
    # Purely elementwise chain of three AffineReLUs; f32 math on the VPU.
    x = x_ref[...].astype(jnp.float32)
    y = jnp.maximum(x + c1_ref[0], 0.0)          # arelu1: m=1,     c=-(b+eps)
    y = jnp.maximum(-1000.0 * y + 1.0, 0.0)      # arelu2: m=-1000, c=1
    y = jnp.maximum(-1000.0 * y + 1.0, 0.0)      # arelu3: m=-1000, c=1
    o_ref[...] = y.astype(o_ref.dtype)


def thresholder(x, b=0.0, eps=1e-6, *, lane_tile=1024,
                target_block_bytes=4 << 20, alias_input=False):
    """Thresholder forward: relu(-1000*relu(-1000*relu(x-(b+eps))+1)+1).

    Works for any input shape; returns an array of the same shape/dtype.
    Set alias_input=True only if the caller donates x (jit donate_argnums);
    then the result is written in place into x's HBM buffer.
    """
    orig_shape = x.shape
    total = x.size
    dtype = x.dtype
    itemsize = jnp.dtype(dtype).itemsize

    # Lane-dense layout: TD lanes per row (multiple of 128). Rows rounded up to
    # the dtype's packed-sublane count (8 f32, 16 bf16, 32 int8/fp8) so padding
    # granularity is one packed vreg, not a full block.
    TD = lane_tile
    pack = max(8, 32 // itemsize)
    rows = pl.cdiv(total, TD)
    rows = ((rows + pack - 1) // pack) * pack
    padded_total = rows * TD

    flat = x.reshape(-1)
    needs_pad = padded_total != total
    if needs_pad:
        flat = jnp.pad(flat, (0, padded_total - total))
    x2d = flat.reshape(rows, TD)

    # Block row count: ~target_block_bytes per buffer (4 MiB => 16 MiB total
    # with double-buffered in+out), but split small/mid inputs into >=2 grid
    # steps so both v7x TensorCores participate; last block may be partial.
    tr_full = max(pack, (target_block_bytes // (TD * itemsize)) // pack * pack)
    tr_half = max(pack, ((pl.cdiv(rows, 2) + pack - 1) // pack) * pack)
    TR = min(tr_full, tr_half)
    grid = (pl.cdiv(rows, TR),)

    # c1 = -(b + eps) passed via SMEM so dynamic b does not trigger recompiles.
    c1 = jnp.asarray(-(b + eps), dtype=jnp.float32).reshape((1,))

    extra = {}
    if alias_input:
        extra["input_output_aliases"] = {1: 0}   # write output into x2d's buffer

    out2d = pl.pallas_call(
        _thresholder_kernel,
        out_shape=jax.ShapeDtypeStruct((rows, TD), dtype),
        grid=grid,
        in_specs=[
            pl.BlockSpec(memory_space=pltpu.MemorySpace.SMEM),   # c1 scalar
            pl.BlockSpec((TR, TD), lambda i: (i, 0)),
        ],
        out_specs=pl.BlockSpec((TR, TD), lambda i: (i, 0)),
        compiler_params=pltpu.CompilerParams(
            dimension_semantics=("parallel",),
            # 16 MiB of buffers: fits v6e/v7x defaults; raise v5e's 16 MiB default.
            vmem_limit_bytes=32 * 1024 * 1024,
        ),
        cost_estimate=pl.CostEstimate(
            flops=9 * padded_total,                       # 3x (mul + add + max)
            transcendentals=0,
            bytes_accessed=2 * padded_total * itemsize,   # kernel read + write
        ),
        **extra,
    )(c1, x2d)

    if needs_pad:
        return out2d.reshape(-1)[:total].reshape(orig_shape)
    return out2d.reshape(orig_shape)


if __name__ == "__main__":
    key = jax.random.PRNGKey(0)
    x = jax.random.normal(key, (2, 4, 16, 16), dtype=jnp.float32)

    out = thresholder(x)
    jax.block_until_ready(out)

    # plain-JAX reference (matches the PyTorch Thresholder with b=0, eps=1e-6)
    b, eps = 0.0, 1e-6
    y = jnp.maximum(x - (b + eps), 0.0)
    y = jnp.maximum(-1000.0 * y + 1.0, 0.0)
    ref = jnp.maximum(-1000.0 * y + 1.0, 0.0)

    assert out.shape == x.shape, out.shape
    assert out.dtype == x.dtype, out.dtype
    assert jnp.allclose(out, ref, rtol=1e-5, atol=1e-5), (out, ref)

    # Also exercise a size that hits the zero-copy (no pad / no slice) path
    # and produces >= 2 grid steps.
    x2 = jax.random.normal(jax.random.PRNGKey(1), (16, 1024), dtype=jnp.float32)
    out2 = thresholder(x2)
    jax.block_until_ready(out2)
    y2 = jnp.maximum(x2 - (b + eps), 0.0)
    y2 = jnp.maximum(-1000.0 * y2 + 1.0, 0.0)
    ref2 = jnp.maximum(-1000.0 * y2 + 1.0, 0.0)
    assert jnp.allclose(out2, ref2, rtol=1e-5, atol=1e-5)

    print("KERNEL_OK")
</pallas_src>

<mosaic_0001>
module attributes {stable_mosaic.version = 11 : i64} {
  func.func @_thresholder_kernel(%arg0: i32, %arg1: memref<1xf32, #tpu.memory_space<smem>>, %arg2: memref<8x1024xf32, #tpu.memory_space<vmem>>, %arg3: memref<8x1024xf32, #tpu.memory_space<vmem>>) attributes {dimension_semantics = [#tpu.dimension_semantics<parallel>], iteration_bounds = array<i64: 1>, scalar_prefetch = 0 : i64, scratch_operands = 0 : i64, tpu.core_type = #tpu.core_type<tc>, window_params = [{transform_indices = @transform_0, window_bounds = array<i64: 1>}, {transform_indices = @transform_1, window_bounds = array<i64: 8, 1024>}, {transform_indices = @transform_2, window_bounds = array<i64: 8, 1024>}]} {
    %c0 = arith.constant 0 : index
    %c0_0 = arith.constant 0 : index
    %0 = vector.load %arg2[%c0, %c0_0] : memref<8x1024xf32, #tpu.memory_space<vmem>>, vector<8x1024xf32>
    %c0_1 = arith.constant 0 : index
    %1 = memref.load %arg1[%c0_1] : memref<1xf32, #tpu.memory_space<smem>>
    %2 = vector.broadcast %1 : f32 to vector<8x1024xf32>
    %3 = arith.addf %0, %2 : vector<8x1024xf32>
    %cst = arith.constant 0.000000e+00 : f32
    %4 = vector.broadcast %cst : f32 to vector<8x1024xf32>
    %5 = arith.maximumf %3, %4 : vector<8x1024xf32>
    %cst_2 = arith.constant -1.000000e+03 : f32
    %6 = vector.broadcast %cst_2 : f32 to vector<8x1024xf32>
    %7 = arith.mulf %6, %5 : vector<8x1024xf32>
    %cst_3 = arith.constant 1.000000e+00 : f32
    %8 = vector.broadcast %cst_3 : f32 to vector<8x1024xf32>
    %9 = arith.addf %7, %8 : vector<8x1024xf32>
    %cst_4 = arith.constant 0.000000e+00 : f32
    %10 = vector.broadcast %cst_4 : f32 to vector<8x1024xf32>
    %11 = arith.maximumf %9, %10 : vector<8x1024xf32>
    %cst_5 = arith.constant -1.000000e+03 : f32
    %12 = vector.broadcast %cst_5 : f32 to vector<8x1024xf32>
    %13 = arith.mulf %12, %11 : vector<8x1024xf32>
    %cst_6 = arith.constant 1.000000e+00 : f32
    %14 = vector.broadcast %cst_6 : f32 to vector<8x1024xf32>
    %15 = arith.addf %13, %14 : vector<8x1024xf32>
    %cst_7 = arith.constant 0.000000e+00 : f32
    %16 = vector.broadcast %cst_7 : f32 to vector<8x1024xf32>
    %17 = arith.maximumf %15, %16 : vector<8x1024xf32>
    %c0_8 = arith.constant 0 : index
    %c0_9 = arith.constant 0 : index
    %18 = vector.load %arg3[%c0_8, %c0_9] : memref<8x1024xf32, #tpu.memory_space<vmem>>, vector<8x1024xf32>
    tpu.vector_store %arg3[%c0_8, %c0_9], %17 {strides = array<i32>} : memref<8x1024xf32, #tpu.memory_space<vmem>>, vector<8x1024xf32>,
    return
  }
  func.func @transform_0(%arg0: i32) -> i32 {
    %c0_i32 = arith.constant 0 : i32
    %c0_i32_0 = arith.constant 0 : i32
    return %c0_i32 : i32
  }
  func.func @transform_1(%arg0: i32) -> (i32, i32) {
    %c0_i32 = arith.constant 0 : i32
    %c0_i32_0 = arith.constant 0 : i32
    return %arg0, %c0_i32 : i32, i32
  }
  func.func @transform_2(%arg0: i32) -> (i32, i32) {
    %c0_i32 = arith.constant 0 : i32
    %c0_i32_0 = arith.constant 0 : i32
    return %arg0, %c0_i32 : i32, i32
  }
}

</mosaic_0001>

<bundles_post_ra>
// kernel: tpu_custom_call.1
= control target key start
LH: loop header
LB: loop body
LE: loop exit
PB: predicated region body
PF: predicated region fallthrough
CT: control target
= control target key end

     0   :  { %8 = vsyncpa [#allocation4], 0  ;;  %s216_s0 = inlined_call_operand.<no memory space> [shape: f32[1], index: 0, kind: input, shape index: {}]   ;;  %s217_s1 = inlined_call_operand.hbm [shape: f32[8,1024], index: 1, kind: input, shape index: {}]   ;;  %s218_s2 = inlined_call_operand.hbm [shape: f32[8,1024], index: 2, kind: output, shape index: {}]  }
   0x1   :  { %9 = vsyncpa [#allocation5], 0  ;;  %s172_s9 = smov [#allocation3]   ;;  %s124_s13 = scalar_lea.hbm %s217_s1, 1024 }
   0x2   :  { %s18_s10 = sshll.u32 %s172_s9, 4  ;;  %p125_p0 = scmp.ne.s32.totalorder %s217_s1, %s124_s13  ;;  %s19_s10 = int_to_ptr.vmem [resolvable:$true] %s18_s10 }
   0x3   :  { %p128_p1 = scmp.lt.u32.totalorder %s124_s13, %s217_s1 }
   0x5   :  { %p130_p2 = pnand %p128_p1, %p125_p0 }
   0x7   :  { %133 = shalt.err (!%p130_p2)
}
   0x8   :  { %s134_s18 = scalar_lea.vmem %s19_s10, 1024  ;;  %p139_p4 = scmp.lt.s32.totalorder %s19_s10, %s19_s10 }
   0x9   :  { %p135_p3 = scmp.ne.s32.totalorder %s19_s10, %s134_s18  ;;  %p140_p5 = scmp.lt.s32.totalorder %s134_s18, %s134_s18 }
   0xb   :  { %p141_p6 = por %p140_p5, %p139_p4 }
   0xd   :  { %p142_p7 = pnand %p141_p6, %p135_p3 }
   0xf   :  { %145 = shalt.err (!%p142_p7)
}
  0x10   :  { %21 = dma.hbm_to_vmem [thread:$0]  %s217_s1, 1024, %s19_s10, [#allocation4]  }
  0x11   :  { %168 = dma.done.wait [#allocation4], 1024  }
  0x12   :  { %169 = vsyncadd [#allocation4], 4294966272  ;;  %v34_v0 = vstv %s216_s0  ;;  %v25_v1 = vld [vmem:[#allocation3] sm:$0xff]  ;;  %v26_v2 = vld [vmem:[#allocation3 + $0x8] sm:$0xff]  ;;  %s173_s0 = smov [#allocation6]  }
  0x13   :  { %v27_v3 = vld [vmem:[#allocation3 + $0x10] sm:$0xff]  ;;  %v35_v4 = vadd.f32 %v34_v0, %v25_v1  ;;  %v36_v5 = vadd.f32 %v34_v0, %v26_v2  ;;  %v28_v7 = vld [vmem:[#allocation3 + $0x18] sm:$0xff]  ;;  %v29_v8 = vld [vmem:[#allocation3 + $0x20] sm:$0xff]  ;;  %s113_s1 = sshll.u32 %s173_s0, 4  ;;  %s114_s1 = int_to_ptr.vmem [resolvable:$true] %s113_s1 }
  0x14   :  { %v37_v6 = vadd.f32 %v34_v0, %v27_v3  ;;  %v30_v9 = vld [vmem:[#allocation3 + $0x28] sm:$0xff]  ;;  %v38_v10 = vadd.f32 %v34_v0, %v28_v7  ;;  %v39_v11 = vadd.f32 %v34_v0, %v29_v8  ;;  %v31_v13 = vld [vmem:[#allocation3 + $0x30] sm:$0xff]  ;;  %v32_v14 = vld [vmem:[#allocation3 + $0x38] sm:$0xff]  ;;  %s146_s23 = scalar_lea.vmem %s114_s1, 1024  ;;  %p151_p9 = scmp.lt.s32.totalorder %s114_s1, %s114_s1 }
  0x15   :  { %v40_v12 = vadd.f32 %v34_v0, %v30_v9  ;;  %v43_v15 = vmax.f32 %v35_v4, 0.0  ;;  %v44_v16 = vmax.f32 %v36_v5, 0.0  ;;  %v41_v18 = vadd.f32 %v34_v0, %v31_v13  ;;  %p147_p8 = scmp.ne.s32.totalorder %s114_s1, %s146_s23  ;;  %p152_p10 = scmp.lt.s32.totalorder %s146_s23, %s146_s23 }
  0x16   :  { %v45_v17 = vmax.f32 %v37_v6, 0.0  ;;  %v46_v19 = vmax.f32 %v38_v10, 0.0  ;;  %v47_v20 = vmax.f32 %v39_v11, 0.0  ;;  %v42_v22 = vadd.f32 %v34_v0, %v32_v14 }
  0x17   :  { %v48_v21 = vmax.f32 %v40_v12, 0.0  ;;  %v51_v23 = vmul.f32 -1000.0, %v43_v15  ;;  %v52_v24 = vmul.f32 -1000.0, %v44_v16  ;;  %v49_v26 = vmax.f32 %v41_v18, 0.0  ;;  %p153_p11 = por %p152_p10, %p151_p9 }
  0x18   :  { %v53_v25 = vmul.f32 -1000.0, %v45_v17  ;;  %v54_v27 = vmul.f32 -1000.0, %v46_v19  ;;  %v55_v28 = vmul.f32 -1000.0, %v47_v20  ;;  %v50_v30 = vmax.f32 %v42_v22, 0.0 }
  0x19   :  { %v56_v29 = vmul.f32 -1000.0, %v48_v21  ;;  %v59_v31 = vadd.f32 1.0, %v51_v23  ;;  %v60_v32 = vadd.f32 1.0, %v52_v24  ;;  %v57_v34 = vmul.f32 -1000.0, %v49_v26  ;;  %p154_p12 = pnand %p153_p11, %p147_p8 }
  0x1a   :  { %v61_v33 = vadd.f32 1.0, %v53_v25  ;;  %v62_v35 = vadd.f32 1.0, %v54_v27  ;;  %v63_v36 = vadd.f32 1.0, %v55_v28  ;;  %v58_v38 = vmul.f32 -1000.0, %v50_v30 }
  0x1b   :  { %v64_v37 = vadd.f32 1.0, %v56_v29  ;;  %v67_v39 = vmax.f32 %v59_v31, 0.0  ;;  %v68_v40 = vmax.f32 %v60_v32, 0.0  ;;  %v65_v42 = vadd.f32 1.0, %v57_v34 }
  0x1c   :  { %v69_v41 = vmax.f32 %v61_v33, 0.0  ;;  %v70_v43 = vmax.f32 %v62_v35, 0.0  ;;  %v71_v44 = vmax.f32 %v63_v36, 0.0  ;;  %v66_v46 = vadd.f32 1.0, %v58_v38 }
  0x1d   :  { %v72_v45 = vmax.f32 %v64_v37, 0.0  ;;  %v75_v47 = vmul.f32 -1000.0, %v67_v39  ;;  %v76_v48 = vmul.f32 -1000.0, %v68_v40  ;;  %v73_v50 = vmax.f32 %v65_v42, 0.0 }
  0x1e   :  { %v77_v49 = vmul.f32 -1000.0, %v69_v41  ;;  %v78_v51 = vmul.f32 -1000.0, %v70_v43  ;;  %v79_v52 = vmul.f32 -1000.0, %v71_v44  ;;  %v74_v54 = vmax.f32 %v66_v46, 0.0 }
  0x1f   :  { %v80_v53 = vmul.f32 -1000.0, %v72_v45  ;;  %v83_v55 = vadd.f32 1.0, %v75_v47  ;;  %v84_v56 = vadd.f32 1.0, %v76_v48  ;;  %v81_v58 = vmul.f32 -1000.0, %v73_v50 }
  0x20   :  { %v85_v57 = vadd.f32 1.0, %v77_v49  ;;  %v86_v59 = vadd.f32 1.0, %v78_v51  ;;  %v87_v60 = vadd.f32 1.0, %v79_v52  ;;  %v82_v62 = vmul.f32 -1000.0, %v74_v54 }
  0x21   :  { %v88_v61 = vadd.f32 1.0, %v80_v53  ;;  %v91_v63 = vmax.f32 %v83_v55, 0.0  ;;  %v92_v0 = vmax.f32 %v84_v56, 0.0  ;;  %v89_v2 = vadd.f32 1.0, %v81_v58 }
  0x22   :  { %v93_v1 = vmax.f32 %v85_v57, 0.0  ;;  %v94_v3 = vmax.f32 %v86_v59, 0.0  ;;  %v95_v4 = vmax.f32 %v87_v60, 0.0  ;;  %v90_v6 = vadd.f32 1.0, %v82_v62 }
  0x23   :  { %v96_v5 = vmax.f32 %v88_v61, 0.0  ;;  %99 = vst [vmem:[#allocation6] sm:$0xff] %v91_v63  ;;  %100 = vst [vmem:[#allocation6 + $0x8] sm:$0xff] %v92_v0  ;;  %v97_v7 = vmax.f32 %v89_v2, 0.0 }
  0x24   :  { %101 = vst [vmem:[#allocation6 + $0x10] sm:$0xff] %v93_v1  ;;  %102 = vst [vmem:[#allocation6 + $0x18] sm:$0xff] %v94_v3  ;;  %v98_v8 = vmax.f32 %v90_v6, 0.0 }
  0x25   :  { %103 = vst [vmem:[#allocation6 + $0x20] sm:$0xff] %v95_v4  ;;  %104 = vst [vmem:[#allocation6 + $0x28] sm:$0xff] %v96_v5 }
  0x26   :  { %105 = vst [vmem:[#allocation6 + $0x30] sm:$0xff] %v97_v7  ;;  %106 = vst [vmem:[#allocation6 + $0x38] sm:$0xff] %v98_v8 }
  0x27   :  { %157 = shalt.err (!%p154_p12)
}
  0x28   :  { %s158_s26 = scalar_lea.hbm %s218_s2, 1024 }
  0x29   :  { %p159_p13 = scmp.ne.s32.totalorder %s218_s2, %s158_s26  ;;  %p162_p0 = scmp.lt.u32.totalorder %s158_s26, %s218_s2 }
  0x2b   :  { %p164_p1 = pnand %p162_p0, %p159_p13 }
  0x2d   :  { %167 = shalt.err (!%p164_p1)
}
  0x2e   :  { %116 = dma.vmem_to_hbm [thread:$0]  %s114_s1, 1024, %s218_s2, [#allocation5]  }
  0x2f   :  { %170 = dma.done.wait [#allocation5], 1024  }
  0x30   :  { %171 = vsyncadd [#allocation5], 4294966272 }
  0x31   :  { %120 = vsyncpa [#allocation4], 1 }
  0x32   :  { %121 = vsyncpa [#allocation5], 1 }

</bundles_post_ra>
